<compile_context>
chip_gen: v7x
topology: tpu7x:2x2x1
jax: 0.10.0
libtpu: 0.0.40
codegen_flags: <defaults>
</compile_context>

<pallas_src>
import functools

import jax
import jax.numpy as jnp
from jax.experimental import pallas as pl
from jax.experimental.pallas import tpu as pltpu

_LANES = 512       # lane-dense width (multiple of 128)
_MAX_TILE_M = 512  # 512 x 512 f32 block = 1 MiB per input per step
_NUM_CORES = 2     # shard reduction across TensorCores (v7x); no-op on 1-TC chips


def _loss_kernel(x_ref, y_ref, o_ref, acc_ref, *, loss_type):
    step = pl.program_id(1)

    @pl.when(step == 0)
    def _():
        acc_ref[...] = jnp.zeros_like(acc_ref)

    # Cast AFTER the DMA: bf16 inputs stay bf16 over HBM->VMEM.
    x = x_ref[...].astype(jnp.float32)
    y = y_ref[...].astype(jnp.float32)
    d = x - y

    if loss_type == "L1":
        e = jnp.abs(d)
    elif loss_type == "L2":
        e = d * d
    elif loss_type == "smooth_L1":
        ad = jnp.abs(d)
        # PyTorch SmoothL1Loss default beta = 1.0
        e = jnp.where(ad < 1.0, 0.5 * d * d, ad - 0.5)
    else:
        raise NotImplementedError(f"loss type {loss_type} not supported in kernel")

    tm, lanes = e.shape
    # Vectorized partial reduction: collapse sublane groups only (pure VPU
    # adds, no cross-lane work).  Final tiny reduction happens in JAX.
    partial = jnp.sum(e.reshape(tm // 8, 8, lanes), axis=0)
    acc_ref[...] += partial

    @pl.when(step == pl.num_programs(1) - 1)
    def _():
        o_ref[...] = acc_ref[...]


def pallas_loss(x, y, loss_type="L1"):
    """Equivalent of Loss(cfg).forward(X, Y) for cfg.type in {L1, L2, smooth_L1}.

    NOTE: if inputs are bf16, pass them as bf16 (do not pre-cast to f32) —
    the kernel casts after the HBM->VMEM DMA, halving HBM traffic.
    """
    assert x.shape == y.shape and x.ndim == 4
    n = 1
    for s in x.shape:
        n *= int(s)

    # ---- lane-dense re-tiling (wrapper-side reshape/pad is layout plumbing) ----
    rows_raw = -(-n // _LANES)
    tile_m = _MAX_TILE_M if rows_raw >= _MAX_TILE_M else -(-rows_raw // 8) * 8
    chunks_total = max(_NUM_CORES, -(-rows_raw // tile_m))
    chunks_total = -(-chunks_total // _NUM_CORES) * _NUM_CORES
    rows = chunks_total * tile_m
    padded_n = rows * _LANES
    chunks_per_core = chunks_total // _NUM_CORES

    def _prep(a):
        a = a.reshape(-1)
        if padded_n != n:
            # zero padding contributes 0 to L1 / L2 / smooth_L1 (x == y there)
            a = jnp.pad(a, (0, padded_n - n))
        return a.reshape(rows, _LANES)

    x2 = _prep(x)
    y2 = _prep(y)

    kernel = functools.partial(_loss_kernel, loss_type=loss_type)
    in_map = lambda c, i: (c * chunks_per_core + i, 0)

    partials = pl.pallas_call(
        kernel,
        out_shape=jax.ShapeDtypeStruct((_NUM_CORES * 8, _LANES), jnp.float32),
        grid_spec=pltpu.PrefetchScalarGridSpec(
            num_scalar_prefetch=0,
            grid=(_NUM_CORES, chunks_per_core),
            in_specs=[
                pl.BlockSpec((tile_m, _LANES), in_map),
                pl.BlockSpec((tile_m, _LANES), in_map),
            ],
            out_specs=pl.BlockSpec((8, _LANES), lambda c, i: (c, 0)),
            scratch_shapes=[pltpu.VMEM((8, _LANES), jnp.float32)],
        ),
        compiler_params=pltpu.CompilerParams(
            dimension_semantics=("parallel", "arbitrary"),
        ),
    )(x2, y2)

    # Tiny final reduction + mean normalization (global mean == mean of
    # per-sample means since all samples share the same C*H*W).
    return (jnp.sum(partials) * (1.0 / float(n))).astype(jnp.float32)


def _reference_loss(x, y, loss_type):
    x = x.astype(jnp.float32)
    y = y.astype(jnp.float32)
    d = x - y
    if loss_type == "L1":
        e = jnp.abs(d)
    elif loss_type == "L2":
        e = d * d
    elif loss_type == "smooth_L1":
        ad = jnp.abs(d)
        e = jnp.where(ad < 1.0, 0.5 * d * d, ad - 0.5)
    else:
        raise NotImplementedError
    return e.mean(axis=(1, 2, 3)).mean()


if __name__ == "__main__":
    # The Loss module has no learnable parameters, so nothing to initialize.
    key = jax.random.PRNGKey(0)
    kx, ky = jax.random.split(key)

    ok = True

    # Primary small test (matches module-style NCHW inputs in [0, 255]).
    B, C, H, W = 2, 4, 16, 16
    X = jax.random.uniform(kx, (B, C, H, W), dtype=jnp.float32) * 255.0
    Y = jax.random.uniform(ky, (B, C, H, W), dtype=jnp.float32) * 255.0

    for lt in ("L1", "L2", "smooth_L1"):
        got = jax.block_until_ready(pallas_loss(X, Y, loss_type=lt))
        ref = jax.block_until_ready(_reference_loss(X, Y, lt))
        if not jnp.allclose(got, ref, rtol=1e-4, atol=1e-3):
            ok = False
            print(f"MISMATCH for {lt} (f32): pallas={got} ref={ref}")

    # bf16 path: inputs stay bf16 through the DMA, cast happens in-kernel.
    Xb = X.astype(jnp.bfloat16)
    Yb = Y.astype(jnp.bfloat16)
    got = jax.block_until_ready(pallas_loss(Xb, Yb, loss_type="L1"))
    ref = jax.block_until_ready(_reference_loss(Xb, Yb, "L1"))
    if not jnp.allclose(got, ref, rtol=1e-4, atol=1e-3):
        ok = False
        print(f"MISMATCH for L1 (bf16): pallas={got} ref={ref}")

    # Larger shape exercising multi-step accumulation across the grid.
    B2, C2, H2, W2 = 4, 3, 256, 256
    k2x, k2y = jax.random.split(jax.random.PRNGKey(1))
    X2 = jax.random.uniform(k2x, (B2, C2, H2, W2), dtype=jnp.float32) * 255.0
    Y2 = jax.random.uniform(k2y, (B2, C2, H2, W2), dtype=jnp.float32) * 255.0
    for lt in ("L1", "L2", "smooth_L1"):
        got = jax.block_until_ready(pallas_loss(X2, Y2, loss_type=lt))
        ref = jax.block_until_ready(_reference_loss(X2, Y2, lt))
        if not jnp.allclose(got, ref, rtol=1e-4, atol=1e-3):
            ok = False
            print(f"MISMATCH for {lt} (large): pallas={got} ref={ref}")

    if ok:
        print("KERNEL_OK")
</pallas_src>

<mosaic_0001>
module attributes {stable_mosaic.version = 11 : i64} {
  func.func @_loss_kernel(%arg0: i32, %arg1: i32, %arg2: memref<8x512xf32, #tpu.memory_space<vmem>>, %arg3: memref<8x512xf32, #tpu.memory_space<vmem>>, %arg4: memref<8x512xf32, #tpu.memory_space<vmem>>, %arg5: memref<8x512xf32, #tpu.memory_space<vmem>>) attributes {dimension_semantics = [#tpu.dimension_semantics<parallel>, #tpu.dimension_semantics<arbitrary>], iteration_bounds = array<i64: 2, 1>, scalar_prefetch = 0 : i64, scratch_operands = 1 : i64, tpu.core_type = #tpu.core_type<tc>, window_params = [{transform_indices = @transform_0, window_bounds = array<i64: 8, 512>}, {transform_indices = @transform_1, window_bounds = array<i64: 8, 512>}, {transform_indices = @transform_2, window_bounds = array<i64: 8, 512>}]} {
    %c0_i32 = arith.constant 0 : i32
    %0 = arith.cmpi eq, %arg1, %c0_i32 : i32
    %1 = arith.extui %0 : i1 to i32
    %c0_i32_0 = arith.constant 0 : i32
    %2 = arith.cmpi ne, %1, %c0_i32_0 : i32
    scf.if %2 {
      %cst_10 = arith.constant 0.000000e+00 : f32
      %15 = vector.broadcast %cst_10 : f32 to vector<8x512xf32>
      %c0_11 = arith.constant 0 : index
      %c0_12 = arith.constant 0 : index
      %16 = vector.load %arg5[%c0_11, %c0_12] : memref<8x512xf32, #tpu.memory_space<vmem>>, vector<8x512xf32>
      tpu.vector_store %arg5[%c0_11, %c0_12], %15 {strides = array<i32>} : memref<8x512xf32, #tpu.memory_space<vmem>>, vector<8x512xf32>,
    } else {
    }
    %c0 = arith.constant 0 : index
    %c0_1 = arith.constant 0 : index
    %3 = vector.load %arg2[%c0, %c0_1] : memref<8x512xf32, #tpu.memory_space<vmem>>, vector<8x512xf32>
    %c0_2 = arith.constant 0 : index
    %c0_3 = arith.constant 0 : index
    %4 = vector.load %arg3[%c0_2, %c0_3] : memref<8x512xf32, #tpu.memory_space<vmem>>, vector<8x512xf32>
    %5 = arith.subf %3, %4 : vector<8x512xf32>
    %6 = math.absf %5 : vector<8x512xf32>
    %7 = vector.shape_cast %6 : vector<8x512xf32> to vector<1x8x512xf32>
    %cst = arith.constant dense<0.000000e+00> : vector<8x512xf32>
    %8 = vector.multi_reduction <add>, %7, %cst [0] : vector<1x8x512xf32> to vector<8x512xf32>
    %c0_4 = arith.constant 0 : index
    %c0_5 = arith.constant 0 : index
    %9 = vector.load %arg5[%c0_4, %c0_5] : memref<8x512xf32, #tpu.memory_space<vmem>>, vector<8x512xf32>
    %10 = arith.addf %9, %8 : vector<8x512xf32>
    %c0_6 = arith.constant 0 : index
    %c0_7 = arith.constant 0 : index
    %11 = vector.load %arg5[%c0_6, %c0_7] : memref<8x512xf32, #tpu.memory_space<vmem>>, vector<8x512xf32>
    tpu.vector_store %arg5[%c0_6, %c0_7], %10 {strides = array<i32>} : memref<8x512xf32, #tpu.memory_space<vmem>>, vector<8x512xf32>,
    %c0_i32_8 = arith.constant 0 : i32
    %12 = arith.cmpi eq, %arg1, %c0_i32_8 : i32
    %13 = arith.extui %12 : i1 to i32
    %c0_i32_9 = arith.constant 0 : i32
    %14 = arith.cmpi ne, %13, %c0_i32_9 : i32
    scf.if %14 {
      %c0_10 = arith.constant 0 : index
      %c0_11 = arith.constant 0 : index
      %15 = vector.load %arg5[%c0_10, %c0_11] : memref<8x512xf32, #tpu.memory_space<vmem>>, vector<8x512xf32>
      %c0_12 = arith.constant 0 : index
      %c0_13 = arith.constant 0 : index
      %16 = vector.load %arg4[%c0_12, %c0_13] : memref<8x512xf32, #tpu.memory_space<vmem>>, vector<8x512xf32>
      tpu.vector_store %arg4[%c0_12, %c0_13], %15 {strides = array<i32>} : memref<8x512xf32, #tpu.memory_space<vmem>>, vector<8x512xf32>,
    } else {
    }
    return
  }
  func.func @transform_0(%arg0: i32, %arg1: i32) -> (i32, i32) {
    %c1_i32 = arith.constant 1 : i32
    %0 = arith.muli %arg0, %c1_i32 : i32
    %1 = arith.addi %0, %arg1 : i32
    %c0_i32 = arith.constant 0 : i32
    %c0_i32_0 = arith.constant 0 : i32
    return %1, %c0_i32 : i32, i32
  }
  func.func @transform_1(%arg0: i32, %arg1: i32) -> (i32, i32) {
    %c1_i32 = arith.constant 1 : i32
    %0 = arith.muli %arg0, %c1_i32 : i32
    %1 = arith.addi %0, %arg1 : i32
    %c0_i32 = arith.constant 0 : i32
    %c0_i32_0 = arith.constant 0 : i32
    return %1, %c0_i32 : i32, i32
  }
  func.func @transform_2(%arg0: i32, %arg1: i32) -> (i32, i32) {
    %c0_i32 = arith.constant 0 : i32
    %c0_i32_0 = arith.constant 0 : i32
    return %arg0, %c0_i32 : i32, i32
  }
}

</mosaic_0001>

<bundles_post_ra>
// kernel: tpu_custom_call.1
= control target key start
LH: loop header
LB: loop body
LE: loop exit
PB: predicated region body
PF: predicated region fallthrough
CT: control target
= control target key end

     0   :  { %7 = vsyncpa [#allocation4], 0  ;;  %s862_s0 = inlined_call_operand.hbm [shape: f32[16,512], index: 0, kind: input, shape index: {}]   ;;  %s863_s1 = inlined_call_operand.hbm [shape: f32[16,512], index: 1, kind: input, shape index: {}]   ;;  %s864_s2 = inlined_call_operand.hbm [shape: f32[16,512], index: 2, kind: output, shape index: {}]  }
   0x1   :  { %9 = vsyncpa [#allocation4 + $0x1], 0 }
   0x2   :  { %10 = vsyncpa [#allocation7], 0 }
   0x3   :  { %12 = vsyncpa [#allocation7 + $0x1], 0 }
   0x4   :  { %13 = vsyncpa [#allocation5], 0 }
   0x5   :  { %15 = vsyncpa [#allocation5 + $0x1], 0  ;;  %s642_s9 = smov 0   ;;  %s644_s10 = smov 0  }
   0x6   :  { %s646_s11 = smov 0   ;;  %s648_s12 = smov 0  }
   0x7   :  { %s650_s13 = smov 0   ;;  %s652_s14 = smov 0  }
   0x8 LB: > { %s387_s15 = sadd.s32 4294967295, %s622_s14   ;;  %s388_s16 = sadd.s32 4294967294, %s622_s14   ;;  %s622_s14 = sphi %s652_s14, %s21_s14   ;;  %s618_s13 = sphi %s650_s13, %s884_s13   ;;  %s614_s12 = sphi %s648_s12, %s883_s12   ;;  %s610_s11 = sphi %s646_s11, %s882_s11   ;;  %s606_s10 = sphi %s644_s10, %s881_s10   ;;  %s602_s9 = sphi %s642_s9, %s880_s9  }
   0x9   : > { %s33_s17 = sadd.s32 1, %s618_s13  ;;  %s42_s18 = sadd.s32 1, %s610_s11 }
   0xa   : > { %p35_p0 = scmp.ge.s32.totalorder %s33_s17, 2  ;;  %p49_p1 = scmp.ne.s32.totalorder %s610_s11, %s606_s10 }
   0xb   : > { %p50_p2 = scmp.eq.s32.totalorder %s622_s14, 0  ;;  %p55_p3 = scmp.ne.s32.totalorder %s606_s10, %s602_s9 }
   0xc   : > { %s886_s17 = smov (%p35_p0, %s33_s17), 0  ;;  %p56_p5 = scmp.eq.s32.totalorder %s387_s15, 0 }
   0xd   : > { %p683_p4 = por %p50_p2, %p49_p1  ;;  %s39_s20 = ssub.s32 %s618_s13, %s886_s17 }
   0xe   : > { %p107_p6 = scmp.eq.s32.totalorder %s387_s15, 1  ;;  %p40_p7 = scmp.eq.s32.totalorder %s39_s20, 0 }
   0xf   : > { %p689_p8 = por %p56_p5, %p55_p3  ;;  %p113_p10 = scmp.eq.s32.totalorder %s388_s16, 1 }
  0x10   : > { %p693_p9 = por %p107_p6, %p49_p1  ;;  %p426_p13 = scmp.lt.s32.totalorder %s622_s14, 2 }
  0x11   : > { %s868_s21 = scalar_select %p689_p8, 1, 0 }
  0x12   : > { %s869_s22 = scalar_select %p693_p9, 1, 0 }
  0x13   : > { %s698_s23 = scalar_select %p40_p7, %s610_s11, %s42_s18  }
  0x14   : > { %p700_p11 = por %p113_p10, %p55_p3  ;;  %s707_s25 = sand.u32 1, %s610_s11  }
  0x15   : > { %s391_s26 = sshll.u32 %s707_s25, 5  ;;  %s406_s27 = sshll.u32 %s618_s13, 9 }
  0x16   : > { %s870_s24 = scalar_select %p700_p11, 1, 0 }
  0x17   : > { %s716_s30 = scalar_lea.hbm %s862_s0, %s406_s27  ;;  %s137_s3 = scalar_lea.vmem [#allocation3], %s391_s26 }
  0x18   : > { %s146_s4 = sshll.u32 %s137_s3, 4  ;;  %p724_p0 = pnand %p426_p13, %p683_p4  ;;  %s720_s4 = int_to_ptr.vmem [resolvable:$true] %s146_s4 }
  0x19   : > { %s134_s6 = scalar_lea.sflag [#allocation4], %s707_s25  ;;  %s476_s7 = scalar_lea.hbm %s716_s30, 512 }
  0x1a   : > { %p477_p3 = scmp.ne.s32.totalorder %s716_s30, %s476_s7  ;;  %p478_p5 = pneg %p724_p0 }
  0x1b   : > { %s481_s16 = scalar_lea.hbm %s862_s0, 1024  ;;  %p482_p4 = scmp.lt.u32.totalorder %s716_s30, %s862_s0 }
  0x1c   : > { %p479_p6 = pnand %p478_p5, %p477_p3  ;;  %p483_p10 = scmp.lt.u32.totalorder %s481_s16, %s476_s7 }
  0x1d   : > { %p485_p12 = scmp.lt.u32.totalorder %s476_s7, %s716_s30 }
  0x1e   : > { %p480_p7 = pneg %p479_p6  ;;  %p484_p13 = por %p483_p10, %p482_p4 }
  0x20   : > { %p486_p1 = por %p485_p12, %p484_p13 }
  0x22   : > { %p487_p2 = pnand %p486_p1, %p480_p7 }
  0x24   : > { %490 = shalt.err (!%p487_p2)
}
  0x25   : > { %s491_s20 = scalar_lea.vmem %s720_s4, 512  ;;  %s624_s28 = smov [#allocation3]  }
  0x26   : > { %p492_p3 = scmp.ne.s32.totalorder %s720_s4, %s491_s20  ;;  %s496_s29 = sshll.u32 %s624_s28, 4  ;;  %s497_s29 = int_to_ptr.vmem [resolvable:$false] %s496_s29 }
  0x27   : > { %s498_s3 = scalar_lea.vmem %s497_s29, 1024  ;;  %p499_p9 = scmp.lt.s32.totalorder %s720_s4, %s497_s29 }
  0x28   : > { %p494_p6 = pnand %p492_p3, %p478_p5  ;;  %p500_p4 = scmp.lt.s32.totalorder %s498_s3, %s491_s20 }
  0x2a   : > { %p495_p11 = pneg %p494_p6  ;;  %p501_p10 = por %p500_p4, %p499_p9 }
  0x2c   : > { %p502_p12 = pnand %p501_p10, %p495_p11 }
  0x2e   : > { %505 = shalt.err (!%p502_p12)
}
  0x2f   : > { %418 = dma.hbm_to_vmem [thread:$0]  (!%p724_p0), %s716_s30, 512, %s720_s4, %s134_s6  }
  0x30   : > { %p872_p1 = scmp.lt.s32.totalorder %s622_s14, 3  ;;  %p873_p2 = scmp.ge.s32.totalorder %s622_s14, 1 }
  0x31   : > { %s769_s16 = scalar_lea.hbm %s863_s1, %s406_s27  ;;  %s157_s18 = scalar_lea.vmem [#allocation6], %s391_s26 }
  0x32   : > { %p760_p7 = pnand %p873_p2, %p872_p1  ;;  %s166_s19 = sshll.u32 %s157_s18, 4  ;;  %s167_s19 = int_to_ptr.vmem [resolvable:$true] %s166_s19 }
  0x33   : > { %s154_s30 = scalar_lea.sflag [#allocation7], %s707_s25  ;;  %s506_s4 = scalar_lea.hbm %s769_s16, 512 }
  0x34   : > { %s874_s7 = scalar_select %p760_p7, 1, 0 }
  0x35   : > { %p507_p9 = scmp.ne.s32.totalorder %s769_s16, %s506_s4  ;;  %s511_s27 = scalar_lea.hbm %s863_s1, 1024 }
  0x36   : > { %p512_p3 = scmp.lt.u32.totalorder %s769_s16, %s863_s1  ;;  %p513_p6 = scmp.lt.u32.totalorder %s511_s27, %s506_s4 }
  0x37   : > { %p509_p11 = pnand %p507_p9, %p478_p5  ;;  %p515_p10 = scmp.lt.u32.totalorder %s506_s4, %s769_s16 }
  0x38   : > { %p514_p4 = por %p513_p6, %p512_p3 }
  0x39   : > { %p510_p13 = pneg %p509_p11 }
  0x3a   : > { %p516_p12 = por %p515_p10, %p514_p4 }
  0x3c   : > { %p517_p1 = pnand %p516_p12, %p510_p13 }
  0x3e   : > { %520 = shalt.err (!%p517_p1)
}
  0x3f   : > { %s521_s25 = scalar_lea.vmem %s167_s19, 512  ;;  %s625_s26 = smov [#allocation6]  }
  0x40   : > { %p522_p2 = scmp.ne.s32.totalorder %s167_s19, %s521_s25  ;;  %s526_s3 = sshll.u32 %s625_s26, 4  ;;  %s527_s3 = int_to_ptr.vmem [resolvable:$false] %s526_s3 }
  0x41   : > { %s528_s8 = scalar_lea.vmem %s527_s3, 1024  ;;  %p529_p8 = scmp.lt.s32.totalorder %s167_s19, %s527_s3 }
  0x42   : > { %p524_p9 = pnand %p522_p2, %p478_p5  ;;  %p530_p7 = scmp.lt.s32.totalorder %s528_s8, %s521_s25 }
  0x44   : > { %p525_p11 = pneg %p524_p9  ;;  %p531_p3 = por %p530_p7, %p529_p8 }
  0x46   : > { %p532_p6 = pnand %p531_p3, %p525_p11 }
  0x48   : > { %535 = shalt.err (!%p532_p6)
}
  0x49   : > { %421 = dma.hbm_to_vmem [thread:$0]  (!%p724_p0), %s769_s16, 512, %s167_s19, %s154_s30  }
  0x4a   : > { %p875_p13 = scmp.ne.s32.totalorder %s874_s7, 0 }
  0x4b   : > { %s796_s15 = sand.u32 (!%p875_p13), 1, %s606_s10   ;;  %p876_p5 = scmp.ne.s32.totalorder (!%p875_p13), %s868_s21, 0 }
  0x4c   : > { %175 = sbr.rel (%p875_p13) target bundleno = 112 (0x70), region = 28  ;;  %s398_s18 = sshll.u32 (!%p875_p13), %s796_s15, 5 }
  0x4d   : > { %s178_s4 = scalar_lea.sflag (!%p875_p13), [#allocation4], %s796_s15  ;;  %s181_s6 = scalar_lea.vmem (!%p875_p13), [#allocation3], %s398_s18 }
  0x53   : > { %589 = dma.done.wait (%p876_p5), %s178_s4, 512  }
  0x54   : > { %591 = vsyncadd (%p876_p5), %s178_s4, 4294966784  ;;  %s187_s5 = scalar_lea.sflag [#allocation7], %s796_s15  ;;  %s190_s16 = scalar_lea.vmem [#allocation6], %s398_s18 }
  0x55   : > { %593 = dma.done.wait (%p876_p5), %s187_s5, 512  }
  0x56   : > { %595 = vsyncadd (%p876_p5), %s187_s5, 4294966784  ;;  %v226_v0 = vld [vmem:[%s181_s6] sm:$0xff]  ;;  %v227_v2 = vld [vmem:[%s181_s6 + $0x8] sm:$0xff]  ;;  %s215_s7 = scalar_lea.vmem [#allocation8], %s398_s18  ;;  %s408_s30 = sshll.u32 %s614_s12, 9 }
  0x57   : > { %v230_v1 = vld [vmem:[%s190_s16] sm:$0xff]  ;;  %v231_v4 = vld [vmem:[%s190_s16 + $0x8] sm:$0xff]  ;;  %v228_v5 = vld [vmem:[%s181_s6 + $0x10] sm:$0xff]  ;;  %s284_s19 = sshll.u32 %s215_s7, 4  ;;  %s815_s27 = scalar_lea.hbm %s864_s2, %s408_s30  ;;  %s810_s19 = int_to_ptr.vmem [resolvable:$true] %s284_s19 }
  0x58   : > { %v234_v3 = vsub.f32 %v226_v0, %v230_v1  ;;  %v232_v6 = vld [vmem:[%s190_s16 + $0x10] sm:$0xff]  ;;  %v235_v7 = vsub.f32 %v227_v2, %v231_v4  ;;  %v229_v9 = vld [vmem:[%s181_s6 + $0x18] sm:$0xff]  ;;  %s270_s12 = scalar_lea.sflag [#allocation5], %s796_s15  ;;  %s536_s28 = scalar_lea.vmem %s810_s19, 512 }
  0x59   : > { %v236_v8 = vsub.f32 %v228_v5, %v232_v6  ;;  %v233_v10 = vld [vmem:[%s190_s16 + $0x18] sm:$0xff]  ;;  %p537_p8 = scmp.ne.s32.totalorder %s810_s19, %s536_s28  ;;  %p877_p0 = scmp.ne.s32.totalorder %s869_s22, 0 }
  0x5a   : > { %v238_v11 = vand.u32 2147483647, %v234_v3  ;;  %v237_v12 = vsub.f32 %v229_v9, %v233_v10  ;;  %v239_v13 = vand.u32 2147483647, %v235_v7  ;;  %s626_s29 = smov [#allocation8]  }
  0x5b   : > { %v240_v14 = vand.u32 2147483647, %v236_v8  ;;  %p538_p7 = pnand %p537_p8, %p877_p0  ;;  %s540_s25 = sshll.u32 %s626_s29, 4  ;;  %s541_s25 = int_to_ptr.vmem [resolvable:$false] %s540_s25 }
  0x5c   : > { %265 = vst [vmem:[%s215_s7] sm:$0xff] %v238_v11  ;;  %v241_v15 = vand.u32 2147483647, %v237_v12  ;;  %266 = vst [vmem:[%s215_s7 + $0x8] sm:$0xff] %v239_v13  ;;  %s542_s26 = scalar_lea.vmem %s541_s25, 1024  ;;  %p543_p10 = scmp.lt.s32.totalorder %s810_s19, %s541_s25 }
  0x5d   : > { %267 = vst [vmem:[%s215_s7 + $0x10] sm:$0xff] %v240_v14  ;;  %p539_p4 = pneg %p538_p7  ;;  %p544_p12 = scmp.lt.s32.totalorder %s542_s26, %s536_s28 }
  0x5e   : > { %268 = vst [vmem:[%s215_s7 + $0x18] sm:$0xff] %v241_v15 }
  0x5f   : > { %p545_p1 = por %p544_p12, %p543_p10 }
  0x61   : > { %p546_p2 = pnand %p545_p1, %p539_p4 }
  0x63   : > { %549 = shalt.err (!%p546_p2)
}
  0x64   : > { %s550_s3 = scalar_lea.hbm %s815_s27, 512  ;;  %s554_s18 = scalar_lea.hbm %s864_s2, 1024 }
  0x65   : > { %p551_p9 = scmp.ne.s32.totalorder %s815_s27, %s550_s3  ;;  %p555_p6 = scmp.lt.u32.totalorder %s815_s27, %s864_s2 }
  0x66   : > { %p556_p13 = scmp.lt.u32.totalorder %s554_s18, %s550_s3  ;;  %p558_p8 = scmp.lt.u32.totalorder %s550_s3, %s815_s27 }
  0x67   : > { %p552_p11 = pnand %p551_p9, %p877_p0 }
  0x68   : > { %p557_p5 = por %p556_p13, %p555_p6 }
  0x69   : > { %p553_p3 = pneg %p552_p11 }
  0x6a   : > { %p559_p7 = por %p558_p8, %p557_p5 }
  0x6c   : > { %p560_p4 = pnand %p559_p7, %p553_p3 }
  0x6e   : > { %563 = shalt.err (!%p560_p4)
}
  0x6f   : > { %413 = dma.vmem_to_hbm [thread:$0]  (%p877_p0), %s810_s19, 512, %s815_s27, %s270_s12  }
  0x70 PF: > { %s296_s5 = sand.u32 1, %s602_s9   ;;  %p878_p10 = scmp.ne.s32.totalorder %s870_s24, 0 }
  0x71   : > { %p879_p12 = scmp.ge.s32.totalorder %s622_s14, 2  ;;  %s297_s16 = scalar_lea.sflag [#allocation5], %s296_s5 }
  0x73   : > { %p423_p1 = pnand %p879_p12, %p878_p10 }
  0x75   : > { %597 = dma.done.wait (!%p423_p1), %s297_s16, 512  }
  0x76   : > { %599 = vsyncadd (!%p423_p1), %s297_s16, 4294966784  ;;  %s21_s14 = sadd.s32 1, %s622_s14   ;;  %s880_s9 = smov %s606_s10 }
  0x77   : > { %p18_p2 = scmp.ge.s32.totalorder %s21_s14, 4   ;;  %s881_s10 = smov %s610_s11 }
  0x78   : > { %s882_s11 = smov %s698_s23  ;;  %s883_s12 = smov %s618_s13 }
  0x79   : > { %s884_s13 = smov %s886_s17  ;;  %20 = sbr.rel (!%p18_p2) target bundleno = 8 (0x8), region = 94 }
  0x80   :  { %302 = vsyncpa [#allocation4], 1 }
  0x81   :  { %304 = vsyncpa [#allocation4 + $0x1], 1 }
  0x82   :  { %305 = vsyncpa [#allocation7], 1 }
  0x83   :  { %307 = vsyncpa [#allocation7 + $0x1], 1 }
  0x84   :  { %308 = vsyncpa [#allocation5], 1 }
  0x85   :  { %310 = vsyncpa [#allocation5 + $0x1], 1 }

</bundles_post_ra>
